<compile_context>
chip_gen: v7x
topology: tpu7x:2x2x1
jax: 0.10.0
libtpu: 0.0.40
codegen_flags: <defaults>
</compile_context>

<pallas_src>
import jax
import jax.numpy as jnp
from jax.experimental import pallas as pl
from jax.experimental.pallas import tpu as pltpu


_SUBLANE = 8
_LANE = 128
_LIVE_BUFFERS = 6          # x, out, pe — each counted double-buffered (conservative)
_MIN_PARALLEL_BLOCKS = 4   # keep both v7x TensorCores fed


def build_pe_table(max_seq_len: int, embed_dim: int) -> jnp.ndarray:
    """Replicates the PyTorch __init__ double loop exactly (float32)."""
    pos = jnp.arange(max_seq_len, dtype=jnp.float32)[:, None]         # (L, 1)
    i_even = jnp.arange(0, embed_dim, 2, dtype=jnp.float32)[None, :]  # even cols i
    # pe[pos, i]   = sin(pos / 10000 ** (2*i/D))
    sin_vals = jnp.sin(pos / (10000.0 ** (2.0 * i_even / embed_dim)))
    # pe[pos, i+1] = cos(pos / 10000 ** (2*(i+1)/D))
    cos_vals = jnp.cos(pos / (10000.0 ** (2.0 * (i_even + 1.0) / embed_dim)))
    pe = jnp.stack([sin_vals, cos_vals], axis=-1).reshape(max_seq_len, embed_dim)
    return pe.astype(jnp.float32)


def _pe_add_kernel(x_ref, pe_ref, o_ref):
    # (tS, tD) tiles; the batch dim is squeezed away by the BlockSpec.
    o_ref[...] = x_ref[...] + pe_ref[...]


def _vmem_budgets():
    """(live-tile budget, scoped vmem limit) in bytes, per TPU generation."""
    try:
        vmem = getattr(pltpu.get_tpu_info(), "vmem_capacity_bytes", None)
    except Exception:
        vmem = None
    if vmem is None:
        vmem = 64 * 1024 * 1024  # conservative default (v7x per-TC size)
    if vmem >= 128 * 1024 * 1024:                      # v5e / v6e: 128 MiB physical
        return 60 * 1024 * 1024, 96 * 1024 * 1024
    return 28 * 1024 * 1024, 48 * 1024 * 1024          # v7x: 64 MiB per TensorCore


def _sublane_pack(itemsize: int) -> int:
    # f32 -> 8, bf16 -> 16, int8/fp8 -> 32: sub-32-bit rows pack along sublanes.
    return _SUBLANE * max(1, 4 // itemsize)


def _pick_tiles(B: int, S: int, D: int, itemsize: int, tile_budget: int):
    pack = _sublane_pack(itemsize)
    per_tile = tile_budget // _LIVE_BUFFERS

    # Lane dim: prefer the full row (contiguous stride-1 DMA per batch row); cap it
    # only if even a one-pack-tall full-width tile would blow the per-buffer budget.
    if pack * D * itemsize <= per_tile:
        tD = D
    else:
        tD = max(_LANE, (per_tile // (pack * itemsize) // _LANE) * _LANE)

    # Sublane dim: largest pack-multiple that fits one buffer's share of VMEM.
    max_rows = max(pack, per_tile // (tD * itemsize))
    if S <= max_rows:
        tS = S  # full extent is always a legal block dim
    else:
        tS = max(pack, (max_rows // pack) * pack)

    # v7x megacore: make sure the parallel grid exposes enough blocks to split
    # across both TensorCores.
    def n_blocks(ts):
        return B * (-(-S // ts))

    while n_blocks(tS) < _MIN_PARALLEL_BLOCKS and tS > pack:
        new_tS = max(pack, ((tS // 2) // pack) * pack)
        if new_tS == tS:
            break
        tS = new_tS

    return tS, tD


def positional_encoding_forward(x: jnp.ndarray, pe: jnp.ndarray) -> jnp.ndarray:
    """x: (B, S, D); pe: (max_seq_len, D). Returns x + pe[:S] (dropout = identity)."""
    B, S, D = x.shape
    pe_slice = pe[:S, :].astype(x.dtype)  # glue: static slice + dtype match in plain JAX

    # Fallback: lane dim not a multiple of 128 -> the Pallas path would run masked
    # partial stores every step; a fused XLA add is strictly better there
    # (also the right choice for genuinely tiny toy shapes).
    if D % _LANE != 0:
        return x + pe_slice[None, :, :]

    tile_budget, vmem_limit = _vmem_budgets()
    tS, tD = _pick_tiles(B, S, D, jnp.dtype(x.dtype).itemsize, tile_budget)
    grid = (pl.cdiv(S, tS), pl.cdiv(D, tD), B)  # batch INNERMOST -> pe DMA reuse

    return pl.pallas_call(
        _pe_add_kernel,
        out_shape=jax.ShapeDtypeStruct((B, S, D), x.dtype),
        grid=grid,
        in_specs=[
            # x: one (tS, tD) tile of one batch row per step; batch dim squeezed.
            pl.BlockSpec((pl.Squeezed(), tS, tD), lambda s, d, b: (b, s, d)),
            # pe: block index depends only on (s, d). Because b is the innermost
            # grid axis, the pe block index is unchanged between consecutive grid
            # steps along b and Pallas skips its DMA -> pe streams ~S*D bytes
            # total, not B*S*D.
            pl.BlockSpec((tS, tD), lambda s, d, b: (s, d)),
        ],
        out_specs=pl.BlockSpec((pl.Squeezed(), tS, tD), lambda s, d, b: (b, s, d)),
        input_output_aliases={0: 0},  # elementwise add: write back in place
        compiler_params=pltpu.CompilerParams(
            dimension_semantics=("parallel", "parallel", "parallel"),
            vmem_limit_bytes=vmem_limit,
        ),
    )(x, pe_slice)


if __name__ == "__main__":
    # Small shapes consistent with the module. D=128 keeps the lane dim dense so
    # the Pallas path is exercised; a D=32 case exercises the XLA fallback.
    max_seq_len = 16
    embed_dim = 128
    dropout = 0.1  # unused in eval-mode forward
    batch = 2
    seq_len = 8

    key = jax.random.PRNGKey(0)
    k1, k2 = jax.random.split(key)

    x = jax.random.normal(k1, (batch, seq_len, embed_dim), dtype=jnp.float32)
    pe = build_pe_table(max_seq_len, embed_dim)

    fwd = jax.jit(positional_encoding_forward)
    y = jax.block_until_ready(fwd(x, pe))

    ref = x + pe[:seq_len, :][None, :, :]
    assert y.shape == (batch, seq_len, embed_dim)
    assert jnp.allclose(y, ref, atol=1e-6), "mismatch vs reference (Pallas path)"

    # Fallback path (lane dim < 128, as in the original toy config).
    x_small = jax.random.normal(k2, (batch, seq_len, 32), dtype=jnp.float32)
    pe_small = build_pe_table(max_seq_len, 32)
    y_small = jax.block_until_ready(fwd(x_small, pe_small))
    ref_small = x_small + pe_small[:seq_len, :][None, :, :]
    assert jnp.allclose(y_small, ref_small, atol=1e-6), "mismatch vs reference (fallback path)"

    print("KERNEL_OK")
</pallas_src>

<mosaic_0001>
module attributes {stable_mosaic.version = 11 : i64} {
  func.func @_pe_add_kernel(%arg0: i32, %arg1: i32, %arg2: i32, %arg3: memref<1x8x128xf32, #tpu.memory_space<vmem>>, %arg4: memref<8x128xf32, #tpu.memory_space<vmem>>, %arg5: memref<1x8x128xf32, #tpu.memory_space<vmem>>) attributes {dimension_semantics = [#tpu.dimension_semantics<parallel>, #tpu.dimension_semantics<parallel>, #tpu.dimension_semantics<parallel>], iteration_bounds = array<i64: 1, 1, 2>, scalar_prefetch = 0 : i64, scratch_operands = 0 : i64, tpu.core_type = #tpu.core_type<tc>, window_params = [{transform_indices = @transform_0, window_bounds = array<i64: 1, 8, 128>}, {transform_indices = @transform_1, window_bounds = array<i64: 8, 128>}, {transform_indices = @transform_2, window_bounds = array<i64: 1, 8, 128>}]} {
    %c0 = arith.constant 0 : index
    %c0_0 = arith.constant 0 : index
    %c0_1 = arith.constant 0 : index
    %0 = vector.load %arg3[%c0, %c0_0, %c0_1] : memref<1x8x128xf32, #tpu.memory_space<vmem>>, vector<1x8x128xf32>
    %1 = vector.shape_cast %0 : vector<1x8x128xf32> to vector<8x128xf32>
    %c0_2 = arith.constant 0 : index
    %c0_3 = arith.constant 0 : index
    %2 = vector.load %arg4[%c0_2, %c0_3] : memref<8x128xf32, #tpu.memory_space<vmem>>, vector<8x128xf32>
    %3 = arith.addf %1, %2 : vector<8x128xf32>
    %c0_4 = arith.constant 0 : index
    %c0_5 = arith.constant 0 : index
    %c0_6 = arith.constant 0 : index
    %4 = vector.load %arg5[%c0_4, %c0_5, %c0_6] : memref<1x8x128xf32, #tpu.memory_space<vmem>>, vector<1x8x128xf32>
    %5 = vector.shape_cast %4 : vector<1x8x128xf32> to vector<8x128xf32>
    %6 = vector.shape_cast %3 : vector<8x128xf32> to vector<1x8x128xf32>
    tpu.vector_store %arg5[%c0_4, %c0_5, %c0_6], %6 {strides = array<i32>} : memref<1x8x128xf32, #tpu.memory_space<vmem>>, vector<1x8x128xf32>,
    return
  }
  func.func @transform_0(%arg0: i32, %arg1: i32, %arg2: i32) -> (i32, i32, i32) {
    %c0_i32 = arith.constant 0 : i32
    return %arg2, %arg0, %arg1 : i32, i32, i32
  }
  func.func @transform_1(%arg0: i32, %arg1: i32, %arg2: i32) -> (i32, i32) {
    %c0_i32 = arith.constant 0 : i32
    return %arg0, %arg1 : i32, i32
  }
  func.func @transform_2(%arg0: i32, %arg1: i32, %arg2: i32) -> (i32, i32, i32) {
    %c0_i32 = arith.constant 0 : i32
    return %arg2, %arg0, %arg1 : i32, i32, i32
  }
}

</mosaic_0001>

<bundles_post_ra>
// kernel: positional_encoding_forward.1
= control target key start
LH: loop header
LB: loop body
LE: loop exit
PB: predicated region body
PF: predicated region fallthrough
CT: control target
= control target key end

     0   :  { %7 = vsyncpa [#allocation3], 0  ;;  %s721_s0 = inlined_call_operand.hbm [shape: f32[2,8,128], index: 0, kind: input, shape index: {}, may-alias: {0,2}]   ;;  %s722_s1 = inlined_call_operand.vmem [shape: f32[8,128], index: 1, kind: input, shape index: {}]   ;;  %s723_s2 = inlined_call_operand.hbm [shape: f32[2,8,128], index: 2, kind: output, shape index: {}, may-alias: {0,2}]  }
   0x1   :  { %9 = vsyncpa [#allocation3 + $0x1], 0 }
   0x2   :  { %10 = vsyncpa [#allocation4], 0 }
   0x3   :  { %12 = vsyncpa [#allocation4 + $0x1], 0  ;;  %s546_s9 = smov 0   ;;  %s548_s10 = smov 0  }
   0x4   :  { %s550_s11 = smov 0   ;;  %s552_s12 = smov 0  }
   0x5   :  { %s554_s13 = smov 0   ;;  %s556_s14 = smov 0  }
   0x6 LB: > { %s339_s15 = sadd.s32 4294967295, %s527_s14   ;;  %s340_s16 = sadd.s32 4294967294, %s527_s14   ;;  %s527_s14 = sphi %s556_s14, %s18_s14   ;;  %s523_s13 = sphi %s554_s13, %s739_s13   ;;  %s519_s12 = sphi %s552_s12, %s738_s12   ;;  %s515_s11 = sphi %s550_s11, %s737_s11   ;;  %s511_s10 = sphi %s548_s10, %s736_s10   ;;  %s507_s9 = sphi %s546_s9, %s735_s9  }
   0x7   : > { %s30_s17 = sadd.s32 1, %s523_s13  ;;  %s48_s18 = sadd.s32 1, %s515_s11 }
   0x8   : > { %p31_p0 = scmp.ge.s32.totalorder %s30_s17, 2  ;;  %p55_p1 = scmp.ne.s32.totalorder %s515_s11, %s511_s10 }
   0x9   : > { %p56_p2 = scmp.eq.s32.totalorder %s527_s14, 0  ;;  %p61_p3 = scmp.ne.s32.totalorder %s511_s10, %s507_s9 }
   0xa   : > { %s741_s17 = smov (%p31_p0, %s30_s17), 0  ;;  %p62_p5 = scmp.eq.s32.totalorder %s339_s15, 0 }
   0xb   : > { %p587_p4 = por %p56_p2, %p55_p1  ;;  %s41_s20 = ssub.s32 %s523_s13, %s741_s17 }
   0xc   : > { %p117_p6 = scmp.eq.s32.totalorder %s339_s15, 1  ;;  %p46_p7 = scmp.eq.s32.totalorder %s41_s20, 0 }
   0xd   : > { %p593_p8 = por %p62_p5, %p61_p3  ;;  %p123_p10 = scmp.eq.s32.totalorder %s340_s16, 1 }
   0xe   : > { %p597_p9 = por %p117_p6, %p55_p1  ;;  %p365_p13 = scmp.lt.s32.totalorder %s527_s14, 2 }
   0xf   : > { %s602_s23 = scalar_select %p46_p7, %s515_s11, %s48_s18  }
  0x10   : > { %s727_s22 = scalar_select %p597_p9, 1, 0 }
  0x11   : > { %p604_p11 = por %p123_p10, %p61_p3  ;;  %s153_s25 = sand.u32 1, %s515_s11  }
  0x12   : > { %s344_s26 = sshll.u32 %s153_s25, 3  ;;  %s345_s27 = sshll.u32 %s523_s13, 7 }
  0x13   : > { %s728_s24 = scalar_select %p604_p11, 1, 0 }
  0x14   : > { %s615_s30 = scalar_lea.hbm %s721_s0, %s345_s27  ;;  %s157_s3 = scalar_lea.vmem [#allocation2], %s344_s26 }
  0x15   : > { %s166_s4 = sshll.u32 %s157_s3, 4  ;;  %p621_p0 = pnand %p365_p13, %p587_p4  ;;  %s617_s4 = int_to_ptr.vmem [resolvable:$true] %s166_s4 }
  0x16   : > { %s154_s6 = scalar_lea.sflag [#allocation3], %s153_s25  ;;  %s415_s7 = scalar_lea.hbm %s615_s30, 128 }
  0x17   : > { %p416_p3 = scmp.ne.s32.totalorder %s615_s30, %s415_s7  ;;  %p417_p5 = pneg %p621_p0 }
  0x18   : > { %s420_s16 = scalar_lea.hbm %s721_s0, 256  ;;  %p421_p4 = scmp.lt.u32.totalorder %s615_s30, %s721_s0 }
  0x19   : > { %p418_p6 = pnand %p417_p5, %p416_p3  ;;  %p422_p10 = scmp.lt.u32.totalorder %s420_s16, %s415_s7 }
  0x1a   : > { %p424_p12 = scmp.lt.u32.totalorder %s415_s7, %s615_s30 }
  0x1b   : > { %p419_p7 = pneg %p418_p6  ;;  %p423_p13 = por %p422_p10, %p421_p4 }
  0x1d   : > { %p425_p1 = por %p424_p12, %p423_p13 }
  0x1f   : > { %p426_p2 = pnand %p425_p1, %p419_p7 }
  0x21   : > { %429 = shalt.err (!%p426_p2)
}
  0x22   : > { %s430_s20 = scalar_lea.vmem %s617_s4, 128  ;;  %s529_s25 = smov [#allocation2]  }
  0x23   : > { %p431_p3 = scmp.ne.s32.totalorder %s617_s4, %s430_s20  ;;  %s435_s26 = sshll.u32 %s529_s25, 4  ;;  %s436_s26 = int_to_ptr.vmem [resolvable:$false] %s435_s26 }
  0x24   : > { %s437_s27 = scalar_lea.vmem %s436_s26, 256  ;;  %p438_p9 = scmp.lt.s32.totalorder %s617_s4, %s436_s26 }
  0x25   : > { %p433_p6 = pnand %p431_p3, %p417_p5  ;;  %p439_p4 = scmp.lt.s32.totalorder %s437_s27, %s430_s20 }
  0x27   : > { %p434_p11 = pneg %p433_p6  ;;  %p440_p10 = por %p439_p4, %p438_p9 }
  0x29   : > { %p441_p12 = pnand %p440_p10, %p434_p11 }
  0x2b   : > { %444 = shalt.err (!%p441_p12)
}
  0x2c   : > { %360 = dma.hbm_to_vmem [thread:$0]  (!%p621_p0), %s615_s30, 128, %s617_s4, %s154_s6  }
  0x2d   : > { %p730_p1 = scmp.lt.s32.totalorder %s527_s14, 3  ;;  %p731_p2 = scmp.ge.s32.totalorder %s527_s14, 1 }
  0x2f   : > { %p172_p5 = pnand %p731_p2, %p730_p1 }
  0x30   : > { %s657_s28 = sand.u32 (!%p172_p5), 1, %s511_s10  }
  0x31   : > { %175 = sbr.rel (%p172_p5) target bundleno = 83 (0x53), region = 28  ;;  %s347_s29 = sshll.u32 (!%p172_p5), %s657_s28, 3 }
  0x32   : > { %s178_s3 = scalar_lea.sflag (!%p172_p5), [#allocation3], %s657_s28  ;;  %s181_s7 = scalar_lea.vmem (!%p172_p5), [#allocation2], %s347_s29 }
  0x38   : > { %498 = dma.done.wait (%p593_p8), %s178_s3, 128  }
  0x39   : > { %500 = vsyncadd (%p593_p8), %s178_s3, 4294967168  ;;  %s208_s30 = scalar_lea.vmem [#allocation5], %s347_s29  ;;  %s350_s5 = sshll.u32 %s519_s12, 7  ;;  %v216_v0 = vld [vmem:[%s181_s7] sm:$0xff] }
  0x3a   : > { %s236_s4 = sshll.u32 %s208_s30, 4  ;;  %v217_v1 = vld [vmem:[%s722_s1] sm:$0xff]  ;;  %s674_s21 = scalar_lea.hbm %s723_s2, %s350_s5  ;;  %s669_s4 = int_to_ptr.vmem [resolvable:$true] %s236_s4 }
  0x3b   : > { %v218_v2 = vadd.f32 %v217_v1, %v216_v0  ;;  %s221_s18 = scalar_lea.sflag [#allocation4], %s657_s28  ;;  %s445_s19 = scalar_lea.vmem %s669_s4, 128 }
  0x3c   : > { %p446_p8 = scmp.ne.s32.totalorder %s669_s4, %s445_s19  ;;  %p732_p9 = scmp.ne.s32.totalorder %s727_s22, 0 }
  0x3d   : > { %219 = vst [vmem:[%s208_s30] sm:$0xff] %v218_v2  ;;  %s530_s12 = smov [#allocation5]  }
  0x3e   : > { %p447_p11 = pnand %p446_p8, %p732_p9  ;;  %s449_s20 = sshll.u32 %s530_s12, 4  ;;  %s450_s20 = int_to_ptr.vmem [resolvable:$false] %s449_s20 }
  0x3f   : > { %s451_s25 = scalar_lea.vmem %s450_s20, 256  ;;  %p452_p7 = scmp.lt.s32.totalorder %s669_s4, %s450_s20 }
  0x40   : > { %p448_p0 = pneg %p447_p11  ;;  %p453_p13 = scmp.lt.s32.totalorder %s451_s25, %s445_s19 }
  0x42   : > { %p454_p3 = por %p453_p13, %p452_p7 }
  0x44   : > { %p455_p6 = pnand %p454_p3, %p448_p0 }
  0x46   : > { %458 = shalt.err (!%p455_p6)
}
  0x47   : > { %s459_s26 = scalar_lea.hbm %s674_s21, 128  ;;  %s463_s29 = scalar_lea.hbm %s723_s2, 256 }
  0x48   : > { %p460_p4 = scmp.ne.s32.totalorder %s674_s21, %s459_s26  ;;  %p464_p1 = scmp.lt.u32.totalorder %s674_s21, %s723_s2 }
  0x49   : > { %p465_p2 = scmp.lt.u32.totalorder %s463_s29, %s459_s26  ;;  %p467_p8 = scmp.lt.u32.totalorder %s459_s26, %s674_s21 }
  0x4a   : > { %p461_p10 = pnand %p460_p4, %p732_p9 }
  0x4b   : > { %p466_p5 = por %p465_p2, %p464_p1 }
  0x4c   : > { %p462_p12 = pneg %p461_p10 }
  0x4d   : > { %p468_p11 = por %p467_p8, %p466_p5 }
  0x4f   : > { %p469_p0 = pnand %p468_p11, %p462_p12 }
  0x51   : > { %472 = shalt.err (!%p469_p0)
}
  0x52   : > { %355 = dma.vmem_to_hbm [thread:$0]  (%p732_p9), %s669_s4, 128, %s674_s21, %s221_s18  }
  0x53 PF: > { %s248_s30 = sand.u32 1, %s507_s9   ;;  %p733_p7 = scmp.ne.s32.totalorder %s728_s24, 0 }
  0x54   : > { %p734_p13 = scmp.ge.s32.totalorder %s527_s14, 2  ;;  %s249_s5 = scalar_lea.sflag [#allocation4], %s248_s30 }
  0x56   : > { %p362_p3 = pnand %p734_p13, %p733_p7 }
  0x58   : > { %502 = dma.done.wait (!%p362_p3), %s249_s5, 128  }
  0x59   : > { %504 = vsyncadd (!%p362_p3), %s249_s5, 4294967168  ;;  %s18_s14 = sadd.s32 1, %s527_s14   ;;  %s735_s9 = smov %s511_s10 }
  0x5a   : > { %p15_p6 = scmp.ge.s32.totalorder %s18_s14, 4   ;;  %s736_s10 = smov %s515_s11 }
  0x5b   : > { %s737_s11 = smov %s602_s23  ;;  %s738_s12 = smov %s523_s13 }
  0x5c   : > { %s739_s13 = smov %s741_s17  ;;  %17 = sbr.rel (!%p15_p6) target bundleno = 6 (0x6), region = 76 }
  0x63   :  { %254 = vsyncpa [#allocation3], 1 }
  0x64   :  { %256 = vsyncpa [#allocation3 + $0x1], 1 }
  0x65   :  { %257 = vsyncpa [#allocation4], 1 }
  0x66   :  { %259 = vsyncpa [#allocation4 + $0x1], 1 }

</bundles_post_ra>
